<compile_context>
chip_gen: v6e
topology: v6e:2x2x1
jax: 0.10.0
libtpu: 0.0.40
codegen_flags: <defaults>
</compile_context>

<pallas_src>
import jax
import jax.numpy as jnp
from jax.experimental import pallas as pl
from jax.experimental.pallas import tpu as pltpu


def _round_up(v, m):
    return (v + m - 1) // m * m


# ----------------------------------------------------------------------------
# Pallas kernel: one (batch, spatial) tile of  relu(scale * (W @ X) + bias)
#   x_ref:     (1, Cin, ts)  f32   NCDHW slab straight from HBM (no relayout)
#   w_ref:     (N, Cin)      bf16  resident weight slab, rows ordered (kd,kh,kw,co)
#   scale_ref: (N, 1)        f32   BatchNorm scale (per output channel, tiled over taps)
#   bias_ref:  (N, 1)        f32   fused conv-bias + BatchNorm bias
#   o_ref:     (1, N, ts)          lane-dense output: spatial (multiple of 128) in lanes
# ----------------------------------------------------------------------------
def _deconv_bn_relu_kernel(x_ref, w_ref, scale_ref, bias_ref, o_ref):
    xb = x_ref[0].astype(jnp.bfloat16)                                   # VPU cast (free)
    acc = jnp.dot(w_ref[...], xb, preferred_element_type=jnp.float32)    # (N, ts) on MXU
    o_ref[0] = jnp.maximum(acc * scale_ref[...] + bias_ref[...], 0.0).astype(o_ref.dtype)


# ----------------------------------------------------------------------------
# DeConvLayer forward (NCDHW in / NCDHW out, PyTorch semantics)
# ----------------------------------------------------------------------------
def deconv_layer_forward(x, weight, conv_bias, bn_params, *,
                         spatial_tile=2048, out_dtype=jnp.float32):
    """
    x:         (B, Cin, D, H, W)     float32  (PyTorch NCDHW)
    weight:    (Cin, Cout, 2, 2, 2)  float32  (PyTorch ConvTranspose3d layout)
    conv_bias: (Cout,)               float32
    bn_params: (gamma, beta, running_mean, running_var, eps)   -- eval mode
    returns:   (B, Cout, 2D, 2H, 2W) out_dtype (default f32; pass bf16 to halve the
               dominant HBM write stream if the consumer tolerates it)
    """
    B, Cin, D, H, W = x.shape
    Cout = weight.shape[1]
    S = D * H * W
    N = 8 * Cout                                  # output rows ordered (kd, kh, kw, co)

    # ---- fold BatchNorm (eval) + conv bias; scale stays in f32 (NOT in bf16 weights) ----
    gamma, beta, mean, var, eps = bn_params
    scale = (gamma / jnp.sqrt(var + eps)).astype(jnp.float32)            # (Cout,)
    bias = ((conv_bias - mean) * scale + beta).astype(jnp.float32)       # (Cout,)
    scale_col = jnp.tile(scale, 8).reshape(N, 1)
    bias_col = jnp.tile(bias, 8).reshape(N, 1)

    # ---- resident bf16 weight slab: wT[(kd,kh,kw,co), ci] = weight[ci, co, kd, kh, kw] ----
    w_t = jnp.transpose(weight, (2, 3, 4, 1, 0)).reshape(N, Cin).astype(jnp.bfloat16)

    # ---- x stays NCDHW: free reshape to (B, Cin, S); spatial tiles feed the lane dim ----
    x3 = x.reshape(B, Cin, S)
    nt = pl.cdiv(S, spatial_tile)                 # spatial tiles per batch element
    ts = _round_up(pl.cdiv(S, nt), 128)           # lane-dense tile (multiple of 128)
    Sp = nt * ts
    if Sp != S:                                   # only ragged S pays this pad copy
        x3 = jnp.pad(x3, ((0, 0), (0, 0), (0, Sp - S)))

    out_bytes = jnp.dtype(out_dtype).itemsize
    cost = pl.CostEstimate(
        flops=2 * B * N * Sp * Cin,
        transcendentals=0,
        bytes_accessed=B * Cin * Sp * 4 + N * Cin * 2 + 2 * N * 4 + B * N * Sp * out_bytes,
    )

    # grid = (B, nt): both axes "parallel" -> shards across v7x's two TensorCores.
    # VMEM/step at ts=2048: x-tile Cin*ts*4 + out-tile N*ts*4, double-buffered -> a few MiB.
    y = pl.pallas_call(
        _deconv_bn_relu_kernel,
        out_shape=jax.ShapeDtypeStruct((B, N, Sp), out_dtype),
        grid=(B, nt),
        in_specs=[
            pl.BlockSpec((1, Cin, ts), lambda b, s: (b, 0, s)),   # x: tiled over spatial
            pl.BlockSpec((N, Cin), lambda b, s: (0, 0)),          # weight slab: resident
            pl.BlockSpec((N, 1), lambda b, s: (0, 0)),            # BN scale:    resident
            pl.BlockSpec((N, 1), lambda b, s: (0, 0)),            # fused bias:  resident
        ],
        out_specs=pl.BlockSpec((1, N, ts), lambda b, s: (b, 0, s)),
        compiler_params=pltpu.CompilerParams(
            dimension_semantics=("parallel", "parallel"),
            vmem_limit_bytes=32 * 1024 * 1024,   # headroom under v7x's 64 MiB physical VMEM
        ),
        cost_estimate=cost,
    )(x3, w_t, scale_col, bias_col)

    if Sp != S:
        y = y[:, :, :S]

    # ---- single XLA transpose: interleave the 2x2x2 taps AND go channels-first (NCDHW) ----
    # out[b, co, 2d+kd, 2h+kh, 2w+kw] = y[b, (kd,kh,kw,co), (d,h,w)]
    y = y.reshape(B, 2, 2, 2, Cout, D, H, W)
    y = jnp.transpose(y, (0, 4, 5, 1, 6, 2, 7, 3))      # (B, Cout, D, kd, H, kh, W, kw)
    return y.reshape(B, Cout, 2 * D, 2 * H, 2 * W)


# ----------------------------------------------------------------------------
# Demo / self-check
# ----------------------------------------------------------------------------
if __name__ == "__main__":
    key = jax.random.PRNGKey(0)
    k_x, k_w, k_b = jax.random.split(key, 3)

    B, Cin, Cout, D, H, W = 2, 32, 16, 8, 8, 8      # S = 512 (lane-dense), N = 128 sublanes
    bound = 1.0 / float(Cin * 8) ** 0.5

    x = jax.random.normal(k_x, (B, Cin, D, H, W), jnp.float32)
    weight = jax.random.uniform(k_w, (Cin, Cout, 2, 2, 2), jnp.float32, -bound, bound)
    conv_bias = jax.random.uniform(k_b, (Cout,), jnp.float32, -bound, bound)
    # BatchNorm3d eval-mode parameters / running stats (non-trivial to exercise the folding)
    bn = (jnp.full((Cout,), 1.2, jnp.float32), jnp.full((Cout,), 0.1, jnp.float32),
          jnp.full((Cout,), 0.05, jnp.float32), jnp.full((Cout,), 0.8, jnp.float32), 1e-5)

    fwd = jax.jit(deconv_layer_forward)
    out = jax.block_until_ready(fwd(x, weight, conv_bias, bn))

    assert out.shape == (B, Cout, 2 * D, 2 * H, 2 * W), out.shape
    assert bool(jnp.isfinite(out).all())

    # pure-JAX f32 reference (tolerance covers the bf16 activation/weight cast for the MXU)
    scale_ref = bn[0] / jnp.sqrt(bn[3] + bn[4])
    bias_ref = (conv_bias - bn[2]) * scale_ref + bn[1]
    ref = jnp.einsum("ncdhw,coijk->nodihjwk", x, weight)
    ref = ref * scale_ref[None, :, None, None, None, None, None, None] \
          + bias_ref[None, :, None, None, None, None, None, None]
    ref = jnp.maximum(ref, 0.0).reshape(B, Cout, 2 * D, 2 * H, 2 * W)
    assert jnp.allclose(out, ref, atol=5e-2, rtol=5e-2), float(jnp.max(jnp.abs(out - ref)))

    print("KERNEL_OK")
</pallas_src>

<mosaic_0001>
module attributes {stable_mosaic.version = 11 : i64} {
  func.func @_deconv_bn_relu_kernel(%arg0: i32, %arg1: i32, %arg2: memref<1x32x512xf32, #tpu.memory_space<vmem>>, %arg3: memref<128x32xbf16, #tpu.memory_space<vmem>>, %arg4: memref<128x1xf32, #tpu.memory_space<vmem>>, %arg5: memref<128x1xf32, #tpu.memory_space<vmem>>, %arg6: memref<1x128x512xf32, #tpu.memory_space<vmem>>) attributes {dimension_semantics = [#tpu.dimension_semantics<parallel>, #tpu.dimension_semantics<parallel>], iteration_bounds = array<i64: 2, 1>, scalar_prefetch = 0 : i64, scratch_operands = 0 : i64, tpu.core_type = #tpu.core_type<tc>, window_params = [{transform_indices = @transform_0, window_bounds = array<i64: 1, 32, 512>}, {pipeline_mode = #tpu.pipeline_mode<synchronous>, transform_indices = @transform_1, window_bounds = array<i64: 128, 32>}, {pipeline_mode = #tpu.pipeline_mode<synchronous>, transform_indices = @transform_2, window_bounds = array<i64: 128, 1>}, {pipeline_mode = #tpu.pipeline_mode<synchronous>, transform_indices = @transform_3, window_bounds = array<i64: 128, 1>}, {transform_indices = @transform_4, window_bounds = array<i64: 1, 128, 512>}]} {
    %c0 = arith.constant 0 : index
    %c0_0 = arith.constant 0 : index
    %c0_1 = arith.constant 0 : index
    %0 = vector.load %arg2[%c0, %c0_0, %c0_1] : memref<1x32x512xf32, #tpu.memory_space<vmem>>, vector<1x32x512xf32>
    %1 = vector.shape_cast %0 : vector<1x32x512xf32> to vector<32x512xf32>
    %2 = arith.truncf %1 : vector<32x512xf32> to vector<32x512xbf16>
    %c0_2 = arith.constant 0 : index
    %c0_3 = arith.constant 0 : index
    %3 = vector.load %arg3[%c0_2, %c0_3] : memref<128x32xbf16, #tpu.memory_space<vmem>>, vector<128x32xbf16>
    %cst = arith.constant dense<0.000000e+00> : vector<128x512xf32>
    %4 = tpu.matmul %3, %2, %cst {dimension_numbers = #tpu.dot_dimension_numbers<[1], [0], [0], [1], [0, 0, 1, 1], [], []>} : vector<128x32xbf16>, vector<32x512xbf16>, vector<128x512xf32> -> vector<128x512xf32>
    %c0_4 = arith.constant 0 : index
    %c0_5 = arith.constant 0 : index
    %5 = vector.load %arg4[%c0_4, %c0_5] : memref<128x1xf32, #tpu.memory_space<vmem>>, vector<128x1xf32>
    %6 = vector.broadcast %5 : vector<128x1xf32> to vector<128x512xf32>
    %7 = arith.mulf %4, %6 : vector<128x512xf32>
    %c0_6 = arith.constant 0 : index
    %c0_7 = arith.constant 0 : index
    %8 = vector.load %arg5[%c0_6, %c0_7] : memref<128x1xf32, #tpu.memory_space<vmem>>, vector<128x1xf32>
    %9 = vector.broadcast %8 : vector<128x1xf32> to vector<128x512xf32>
    %10 = arith.addf %7, %9 : vector<128x512xf32>
    %cst_8 = arith.constant 0.000000e+00 : f32
    %11 = vector.broadcast %cst_8 : f32 to vector<128x512xf32>
    %12 = arith.maximumf %10, %11 : vector<128x512xf32>
    %c0_9 = arith.constant 0 : index
    %c0_10 = arith.constant 0 : index
    %c0_11 = arith.constant 0 : index
    %13 = vector.load %arg6[%c0_9, %c0_10, %c0_11] : memref<1x128x512xf32, #tpu.memory_space<vmem>>, vector<1x128x512xf32>
    %14 = vector.shape_cast %13 : vector<1x128x512xf32> to vector<128x512xf32>
    %15 = vector.shape_cast %12 : vector<128x512xf32> to vector<1x128x512xf32>
    tpu.vector_store %arg6[%c0_9, %c0_10, %c0_11], %15 {strides = array<i32>} : memref<1x128x512xf32, #tpu.memory_space<vmem>>, vector<1x128x512xf32>,
    return
  }
  func.func @transform_0(%arg0: i32, %arg1: i32) -> (i32, i32, i32) {
    %c0_i32 = arith.constant 0 : i32
    %c0_i32_0 = arith.constant 0 : i32
    return %arg0, %c0_i32, %arg1 : i32, i32, i32
  }
  func.func @transform_1(%arg0: i32, %arg1: i32) -> (i32, i32) {
    %c0_i32 = arith.constant 0 : i32
    %c0_i32_0 = arith.constant 0 : i32
    %c0_i32_1 = arith.constant 0 : i32
    return %c0_i32, %c0_i32_0 : i32, i32
  }
  func.func @transform_2(%arg0: i32, %arg1: i32) -> (i32, i32) {
    %c0_i32 = arith.constant 0 : i32
    %c0_i32_0 = arith.constant 0 : i32
    %c0_i32_1 = arith.constant 0 : i32
    return %c0_i32, %c0_i32_0 : i32, i32
  }
  func.func @transform_3(%arg0: i32, %arg1: i32) -> (i32, i32) {
    %c0_i32 = arith.constant 0 : i32
    %c0_i32_0 = arith.constant 0 : i32
    %c0_i32_1 = arith.constant 0 : i32
    return %c0_i32, %c0_i32_0 : i32, i32
  }
  func.func @transform_4(%arg0: i32, %arg1: i32) -> (i32, i32, i32) {
    %c0_i32 = arith.constant 0 : i32
    %c0_i32_0 = arith.constant 0 : i32
    return %arg0, %c0_i32, %arg1 : i32, i32, i32
  }
}

</mosaic_0001>

<bundles_post_ra>
// kernel: tile.18
= control target key start
LH: loop header
LB: loop body
LE: loop exit
PB: predicated region body
PF: predicated region fallthrough
CT: control target
= control target key end

     0   :  { %s22_s0 = inlined_call_operand.vmem [shape: f32[16], index: 0, kind: input, shape index: {}]   ;;  %s23_s1 = inlined_call_operand.vmem [shape: f32[8,16], index: 1, kind: output, shape index: {}]  }
   0x1   :  { %v4_v0 = vld [vmem:[%s22_s0] ss:$0 sm:$0xff] }
   0x2   :  { %5 = vst [vmem:[%s23_s1] sm:$0xff] %v4_v0 }

// kernel: tile.0
= control target key start
LH: loop header
LB: loop body
LE: loop exit
PB: predicated region body
PF: predicated region fallthrough
CT: control target
= control target key end

     0   :  { %vm3_vm0 = vcmask 7168   ;;  %s264_s8 = smov 125   ;;  %s265_s17 = smov 126   ;;  %s547_s0 = inlined_call_operand.vmem [shape: f32[8,16], index: 0, kind: input, shape index: {}]   ;;  %s548_s1 = inlined_call_operand.vmem [shape: f32[128,1], index: 1, kind: output, shape index: {}]  }
   0x1   :  { %v8_v0 = vld [vmem:[%s547_s0] sm:$0xff]   ;;  %s263_s0 = smov 127   ;;  %s266_s18 = smov 124  }
   0x2   :  { %9 = vrot.lane.b32.xlu0 %v8_v0, %s263_s0  ;;  %33 = vrot.lane.b32.xlu1 %v8_v0, %s264_s8  ;;  %4 = vst.msk [vmem:[%s548_s1] ss:$16 sm:$0x3] %vm3_vm0, %v8_v0   ;;  %5 = vst.msk [vmem:[%s548_s1] ss:$16 sm:$0xc] %vm3_vm0, %v8_v0  }
   0x3   :  { %6 = vst.msk [vmem:[%s548_s1] ss:$16 sm:$0x30] %vm3_vm0, %v8_v0   ;;  %7 = vst.msk [vmem:[%s548_s1] ss:$16 sm:$0xc0] %vm3_vm0, %v8_v0  }
   0x4   :  { %s267_s19 = smov 123   ;;  %s268_s20 = smov 122  }
   0x5   :  { %s269_s21 = smov 121   ;;  %s270_s22 = smov 120  }
   0x6   :  { %21 = vrot.lane.b32.xlu0 %v8_v0, %s265_s17  ;;  %45 = vrot.lane.b32.xlu1 %v8_v0, %s266_s18  ;;  %s271_s23 = smov 119   ;;  %s272_s24 = smov 118  }
   0x7   :  { %s273_s25 = smov 117   ;;  %s274_s26 = smov 116  }
   0x8   :  { %s275_s27 = smov 115   ;;  %s276_s28 = smov 114  }
   0x9   :  { %s277_s29 = smov 113  }
   0xa   :  { %57 = vrot.lane.b32.xlu0 %v8_v0, %s267_s19  ;;  %69 = vrot.lane.b32.xlu1 %v8_v0, %s268_s20 }
   0xe   :  { %81 = vrot.lane.b32.xlu0 %v8_v0, %s269_s21  ;;  %93 = vrot.lane.b32.xlu1 %v8_v0, %s270_s22 }
  0x12   :  { %105 = vrot.lane.b32.xlu0 %v8_v0, %s271_s23  ;;  %117 = vrot.lane.b32.xlu1 %v8_v0, %s272_s24 }
  0x16   :  { %129 = vrot.lane.b32.xlu0 %v8_v0, %s273_s25  ;;  %141 = vrot.lane.b32.xlu1 %v8_v0, %s274_s26 }
  0x1a   :  { %153 = vrot.lane.b32.xlu0 %v8_v0, %s275_s27  ;;  %165 = vrot.lane.b32.xlu1 %v8_v0, %s276_s28 }
  0x1e   :  { %177 = vrot.lane.b32.xlu0 %v8_v0, %s277_s29 }
  0x74   :  { %v10_v1 = vpop.permute.xlu0 %9   ;;  %v34_v2 = vpop.permute.xlu1 %33  }
  0x75   :  { %188 = vst.msk [vmem:[%s548_s1 + $0x1] ss:$16 sm:$0x3] %vm3_vm0, %v10_v1   ;;  %189 = vst.msk [vmem:[%s548_s1 + $0x1] ss:$16 sm:$0xc] %vm3_vm0, %v10_v1  }
  0x76   :  { %190 = vst.msk [vmem:[%s548_s1 + $0x1] ss:$16 sm:$0x30] %vm3_vm0, %v10_v1   ;;  %191 = vst.msk [vmem:[%s548_s1 + $0x1] ss:$16 sm:$0xc0] %vm3_vm0, %v10_v1  }
  0x77   :  { %196 = vst.msk [vmem:[%s548_s1 + $0x3] ss:$16 sm:$0x3] %vm3_vm0, %v34_v2   ;;  %197 = vst.msk [vmem:[%s548_s1 + $0x3] ss:$16 sm:$0xc] %vm3_vm0, %v34_v2  }
  0x78   :  { %198 = vst.msk [vmem:[%s548_s1 + $0x3] ss:$16 sm:$0x30] %vm3_vm0, %v34_v2   ;;  %199 = vst.msk [vmem:[%s548_s1 + $0x3] ss:$16 sm:$0xc0] %vm3_vm0, %v34_v2   ;;  %v22_v3 = vpop.permute.xlu0 %21   ;;  %v46_v4 = vpop.permute.xlu1 %45  }
  0x79   :  { %192 = vst.msk [vmem:[%s548_s1 + $0x2] ss:$16 sm:$0x3] %vm3_vm0, %v22_v3   ;;  %193 = vst.msk [vmem:[%s548_s1 + $0x2] ss:$16 sm:$0xc] %vm3_vm0, %v22_v3  }
  0x7a   :  { %194 = vst.msk [vmem:[%s548_s1 + $0x2] ss:$16 sm:$0x30] %vm3_vm0, %v22_v3   ;;  %195 = vst.msk [vmem:[%s548_s1 + $0x2] ss:$16 sm:$0xc0] %vm3_vm0, %v22_v3  }
  0x7b   :  { %200 = vst.msk [vmem:[%s548_s1 + $0x4] ss:$16 sm:$0x3] %vm3_vm0, %v46_v4   ;;  %201 = vst.msk [vmem:[%s548_s1 + $0x4] ss:$16 sm:$0xc] %vm3_vm0, %v46_v4  }
  0x7c   :  { %202 = vst.msk [vmem:[%s548_s1 + $0x4] ss:$16 sm:$0x30] %vm3_vm0, %v46_v4   ;;  %203 = vst.msk [vmem:[%s548_s1 + $0x4] ss:$16 sm:$0xc0] %vm3_vm0, %v46_v4   ;;  %v58_v5 = vpop.permute.xlu0 %57   ;;  %v70_v6 = vpop.permute.xlu1 %69  }
  0x7d   :  { %204 = vst.msk [vmem:[%s548_s1 + $0x5] ss:$16 sm:$0x3] %vm3_vm0, %v58_v5   ;;  %205 = vst.msk [vmem:[%s548_s1 + $0x5] ss:$16 sm:$0xc] %vm3_vm0, %v58_v5  }
  0x7e   :  { %206 = vst.msk [vmem:[%s548_s1 + $0x5] ss:$16 sm:$0x30] %vm3_vm0, %v58_v5   ;;  %207 = vst.msk [vmem:[%s548_s1 + $0x5] ss:$16 sm:$0xc0] %vm3_vm0, %v58_v5  }
  0x7f   :  { %208 = vst.msk [vmem:[%s548_s1 + $0x6] ss:$16 sm:$0x3] %vm3_vm0, %v70_v6   ;;  %209 = vst.msk [vmem:[%s548_s1 + $0x6] ss:$16 sm:$0xc] %vm3_vm0, %v70_v6  }
  0x80   :  { %210 = vst.msk [vmem:[%s548_s1 + $0x6] ss:$16 sm:$0x30] %vm3_vm0, %v70_v6   ;;  %211 = vst.msk [vmem:[%s548_s1 + $0x6] ss:$16 sm:$0xc0] %vm3_vm0, %v70_v6   ;;  %v82_v7 = vpop.permute.xlu0 %81   ;;  %v94_v8 = vpop.permute.xlu1 %93  }
  0x81   :  { %212 = vst.msk [vmem:[%s548_s1 + $0x7] ss:$16 sm:$0x3] %vm3_vm0, %v82_v7   ;;  %213 = vst.msk [vmem:[%s548_s1 + $0x7] ss:$16 sm:$0xc] %vm3_vm0, %v82_v7  }
  0x82   :  { %214 = vst.msk [vmem:[%s548_s1 + $0x7] ss:$16 sm:$0x30] %vm3_vm0, %v82_v7   ;;  %215 = vst.msk [vmem:[%s548_s1 + $0x7] ss:$16 sm:$0xc0] %vm3_vm0, %v82_v7  }
  0x83   :  { %216 = vst.msk [vmem:[%s548_s1 + $0x8] ss:$16 sm:$0x3] %vm3_vm0, %v94_v8   ;;  %217 = vst.msk [vmem:[%s548_s1 + $0x8] ss:$16 sm:$0xc] %vm3_vm0, %v94_v8  }
  0x84   :  { %218 = vst.msk [vmem:[%s548_s1 + $0x8] ss:$16 sm:$0x30] %vm3_vm0, %v94_v8   ;;  %219 = vst.msk [vmem:[%s548_s1 + $0x8] ss:$16 sm:$0xc0] %vm3_vm0, %v94_v8   ;;  %v106_v9 = vpop.permute.xlu0 %105   ;;  %v118_v10 = vpop.permute.xlu1 %117  }
  0x85   :  { %220 = vst.msk [vmem:[%s548_s1 + $0x9] ss:$16 sm:$0x3] %vm3_vm0, %v106_v9   ;;  %221 = vst.msk [vmem:[%s548_s1 + $0x9] ss:$16 sm:$0xc] %vm3_vm0, %v106_v9  }
  0x86   :  { %222 = vst.msk [vmem:[%s548_s1 + $0x9] ss:$16 sm:$0x30] %vm3_vm0, %v106_v9   ;;  %223 = vst.msk [vmem:[%s548_s1 + $0x9] ss:$16 sm:$0xc0] %vm3_vm0, %v106_v9  }
  0x87   :  { %224 = vst.msk [vmem:[%s548_s1 + $0xa] ss:$16 sm:$0x3] %vm3_vm0, %v118_v10   ;;  %225 = vst.msk [vmem:[%s548_s1 + $0xa] ss:$16 sm:$0xc] %vm3_vm0, %v118_v10  }
  0x88   :  { %226 = vst.msk [vmem:[%s548_s1 + $0xa] ss:$16 sm:$0x30] %vm3_vm0, %v118_v10   ;;  %227 = vst.msk [vmem:[%s548_s1 + $0xa] ss:$16 sm:$0xc0] %vm3_vm0, %v118_v10   ;;  %v130_v11 = vpop.permute.xlu0 %129   ;;  %v142_v12 = vpop.permute.xlu1 %141  }
  0x89   :  { %228 = vst.msk [vmem:[%s548_s1 + $0xb] ss:$16 sm:$0x3] %vm3_vm0, %v130_v11   ;;  %229 = vst.msk [vmem:[%s548_s1 + $0xb] ss:$16 sm:$0xc] %vm3_vm0, %v130_v11  }
  0x8a   :  { %230 = vst.msk [vmem:[%s548_s1 + $0xb] ss:$16 sm:$0x30] %vm3_vm0, %v130_v11   ;;  %231 = vst.msk [vmem:[%s548_s1 + $0xb] ss:$16 sm:$0xc0] %vm3_vm0, %v130_v11  }
  0x8b   :  { %232 = vst.msk [vmem:[%s548_s1 + $0xc] ss:$16 sm:$0x3] %vm3_vm0, %v142_v12   ;;  %233 = vst.msk [vmem:[%s548_s1 + $0xc] ss:$16 sm:$0xc] %vm3_vm0, %v142_v12  }
  0x8c   :  { %234 = vst.msk [vmem:[%s548_s1 + $0xc] ss:$16 sm:$0x30] %vm3_vm0, %v142_v12   ;;  %235 = vst.msk [vmem:[%s548_s1 + $0xc] ss:$16 sm:$0xc0] %vm3_vm0, %v142_v12   ;;  %v154_v13 = vpop.permute.xlu0 %153   ;;  %v166_v14 = vpop.permute.xlu1 %165  }
  0x8d   :  { %236 = vst.msk [vmem:[%s548_s1 + $0xd] ss:$16 sm:$0x3] %vm3_vm0, %v154_v13   ;;  %237 = vst.msk [vmem:[%s548_s1 + $0xd] ss:$16 sm:$0xc] %vm3_vm0, %v154_v13  }
  0x8e   :  { %238 = vst.msk [vmem:[%s548_s1 + $0xd] ss:$16 sm:$0x30] %vm3_vm0, %v154_v13   ;;  %239 = vst.msk [vmem:[%s548_s1 + $0xd] ss:$16 sm:$0xc0] %vm3_vm0, %v154_v13  }
  0x8f   :  { %240 = vst.msk [vmem:[%s548_s1 + $0xe] ss:$16 sm:$0x3] %vm3_vm0, %v166_v14   ;;  %241 = vst.msk [vmem:[%s548_s1 + $0xe] ss:$16 sm:$0xc] %vm3_vm0, %v166_v14  }
  0x90   :  { %242 = vst.msk [vmem:[%s548_s1 + $0xe] ss:$16 sm:$0x30] %vm3_vm0, %v166_v14   ;;  %243 = vst.msk [vmem:[%s548_s1 + $0xe] ss:$16 sm:$0xc0] %vm3_vm0, %v166_v14   ;;  %v178_v15 = vpop.permute.xlu0 %177  }
  0x91   :  { %244 = vst.msk [vmem:[%s548_s1 + $0xf] ss:$16 sm:$0x3] %vm3_vm0, %v178_v15   ;;  %245 = vst.msk [vmem:[%s548_s1 + $0xf] ss:$16 sm:$0xc] %vm3_vm0, %v178_v15  }
  0x92   :  { %246 = vst.msk [vmem:[%s548_s1 + $0xf] ss:$16 sm:$0x30] %vm3_vm0, %v178_v15   ;;  %247 = vst.msk [vmem:[%s548_s1 + $0xf] ss:$16 sm:$0xc0] %vm3_vm0, %v178_v15  }

// kernel: deconv_layer_forward.1
= control target key start
LH: loop header
LB: loop body
LE: loop exit
PB: predicated region body
PF: predicated region fallthrough
CT: control target
= control target key end

     0   :  { %s1226_s15 = smov 0   ;;  %s1228_s16 = smov 0   ;;  %s1585_s0 = inlined_call_operand.vmem [shape: f32[2,32,512], index: 0, kind: input, shape index: {}]   ;;  %s1586_s1 = inlined_call_operand.vmem [shape: bf16[128,32], index: 1, kind: input, shape index: {}]   ;;  %s1587_s2 = inlined_call_operand.vmem [shape: f32[128,1], index: 2, kind: input, shape index: {}]   ;;  %s1588_s3 = inlined_call_operand.vmem [shape: f32[128,1], index: 3, kind: input, shape index: {}]   ;;  %s1589_s4 = inlined_call_operand.vmem [shape: f32[2,128,512], index: 4, kind: output, shape index: {}]  }
   0x1   :  { %s1230_s17 = smov 0  }
   0x2 LB: > { %s26_s18 = sadd.s32 1, %s1194_s16  ;;  %p1108_p0 = scmp.ge.s32.totalorder %s1198_s17, 1  ;;  %s1198_s17 = sphi %s1230_s17, %s14_s17   ;;  %s1194_s16 = sphi %s1228_s16, %s1591_s16   ;;  %s1190_s15 = sphi %s1226_s15, %s1590_s15  }
   0x3   : > { %p28_p1 = scmp.ge.s32.totalorder %s26_s18, 2  ;;  %p183_p2 = scmp.lt.s32.totalorder %s1198_s17, 3 }
   0x5   : > { %s1593_s18 = smov (%p28_p1, %s26_s18), 0  ;;  %p184_p3 = pnand %p1108_p0, %p183_p2 }
   0x6   : > { %p218_p4 = scmp.lt.s32.totalorder (!%p184_p3), %s1190_s15, 1 }
   0x7   : > { %187 = sbr.rel (%p184_p3) target bundleno = 291 (0x123), region = 36 }
   0xc   : > { %v1200_v0 = vmov 0   ;;  %s1595_s15 = smov (!%p218_p4, %s1190_s15), 1  ;;  %v571_v1 = vld [vmem:[%s1587_s2 + $0x10] sm:$0xff]  ;;  %v569_v2 = vld [vmem:[%s1587_s2] sm:$0xff]  ;;  %v572_v3 = vld [vmem:[%s1587_s2 + $0x18] sm:$0xff]  ;;  %vm318_vm0 = vcmask 261120  }
   0xd   : > { %375 = vmatprep.mubr.bf16.mxu0 %v1200_v0  ;;  %488 = vmatprep.mubr.bf16.mxu1 %v1200_v0  ;;  %s1139_s23 = sshll.u32 %s1595_s15, 7  ;;  %v570_v4 = vld [vmem:[%s1587_s2 + $0x8] sm:$0xff]  ;;  %v573_v18 = vld [vmem:[%s1587_s2 + $0x20] sm:$0xff]  ;;  %v576_v31 = vld [vmem:[%s1587_s2 + $0x38] sm:$0xff]  ;;  %s1140_s11 = sshll.u32 %s1595_s15, 9 }
   0xe   : > { %1167 = vset.pattern.permute.xlu1 %v1200_v0  ;;  %1166 = vset.pattern.permute.xlu0 %v1200_v0  ;;  %s1266_s30 = scalar_lea.vmem %s1585_s0, %s1139_s23  ;;  %v574_v8 = vld [vmem:[%s1587_s2 + $0x28] sm:$0xff]  ;;  %v1168_v32 = vld [vmem:[%s1586_s1] sm:$0xff]   ;;  %v575_v33 = vld [vmem:[%s1587_s2 + $0x30] sm:$0xff]  ;;  %s1454_s14 = scalar_lea.vmem %s1589_s4, %s1140_s11 }
   0xf   : > { %597 = vperm.xlu1 %1167, %v571_v1   ;;  %587 = vperm.xlu0 %1166, %v569_v2   ;;  %v247_v5 = vld [vmem:[%s1266_s30 + $0x48] sm:$0xff]  ;;  %v249_v7 = vld [vmem:[%s1266_s30 + $0x58] sm:$0xff]  ;;  %v246_v11 = vld [vmem:[%s1266_s30 + $0x40] sm:$0xff] }
  0x10   : > { %v251_v6 = vld [vmem:[%s1266_s30 + $0x68] sm:$0xff]  ;;  %v253_v10 = vld [vmem:[%s1266_s30 + $0x78] sm:$0xff]  ;;  %v250_v12 = vld [vmem:[%s1266_s30 + $0x60] sm:$0xff] }
  0x11   : > { %v259_v9 = vpack.c.bf16 %v251_v6, %v247_v5  ;;  %v261_v13 = vpack.c.bf16 %v253_v10, %v249_v7  ;;  %v258_v14 = vpack.c.bf16 %v250_v12, %v246_v11  ;;  %v248_v15 = vld [vmem:[%s1266_s30 + $0x50] sm:$0xff]  ;;  %v239_v17 = vld [vmem:[%s1266_s30 + $0x8] sm:$0xff]  ;;  %v241_v21 = vld [vmem:[%s1266_s30 + $0x18] sm:$0xff] }
  0x12   : > { %v252_v16 = vld [vmem:[%s1266_s30 + $0x70] sm:$0xff]  ;;  %v243_v20 = vld [vmem:[%s1266_s30 + $0x28] sm:$0xff]  ;;  %v245_v22 = vld [vmem:[%s1266_s30 + $0x38] sm:$0xff] }
  0x13   : > { %602 = vperm.xlu1 %1167, %v572_v3   ;;  %592 = vperm.xlu0 %1166, %v570_v4   ;;  %v260_v19 = vpack.c.bf16 %v252_v16, %v248_v15  ;;  %v255_v23 = vpack.c.bf16 %v243_v20, %v239_v17  ;;  %v257_v24 = vpack.c.bf16 %v245_v22, %v241_v21  ;;  %v238_v25 = vld [vmem:[%s1266_s30] sm:$0xff]  ;;  %v240_v27 = vld [vmem:[%s1266_s30 + $0x10] sm:$0xff]  ;;  %v578_v34 = vld [vmem:[%s1587_s2 + $0x48] sm:$0xff] }
  0x14   : > { %355 = vmatprep.subr.bf16.mxu0 %v259_v9  ;;  %468 = vmatprep.subr.bf16.mxu1 %v261_v13  ;;  %v242_v26 = vld [vmem:[%s1266_s30 + $0x20] sm:$0xff]  ;;  %v244_v29 = vld [vmem:[%s1266_s30 + $0x30] sm:$0xff]  ;;  %v580_v36 = vld [vmem:[%s1587_s2 + $0x58] sm:$0xff] }
  0x15   : > { %356 = vmatpush1.bf16.msra.mxu0 %v258_v14  ;;  %469 = vmatpush1.bf16.msra.mxu1 %v260_v19  ;;  %v254_v28 = vpack.c.bf16 %v242_v26, %v238_v25  ;;  %v256_v30 = vpack.c.bf16 %v244_v29, %v240_v27  ;;  %v577_v35 = vld [vmem:[%s1587_s2 + $0x40] sm:$0xff]  ;;  %v1169_v37 = vld [vmem:[%s1586_s1 + $0x8] sm:$0xff]   ;;  %v579_v38 = vld [vmem:[%s1587_s2 + $0x50] sm:$0xff] }
  0x16   : > { %357 = vmatprep.subr.bf16.mxu0 %v255_v23  ;;  %470 = vmatprep.subr.bf16.mxu1 %v257_v24  ;;  %v582_v39 = vld [vmem:[%s1587_s2 + $0x68] sm:$0xff]  ;;  %v581_v40 = vld [vmem:[%s1587_s2 + $0x60] sm:$0xff]  ;;  %v584_v41 = vld [vmem:[%s1587_s2 + $0x78] sm:$0xff] }
  0x17   : > { %612 = vperm.xlu1 %1167, %v574_v8   ;;  %607 = vperm.xlu0 %1166, %v573_v18   ;;  %v1170_v42 = vld [vmem:[%s1586_s1 + $0x10] sm:$0xff]   ;;  %v730_v44 = vld [vmem:[%s1588_s3 + $0x8] sm:$0xff]  ;;  %v729_v45 = vld [vmem:[%s1588_s3] sm:$0xff] }
  0x18   : > { %v583_v43 = vld [vmem:[%s1587_s2 + $0x70] sm:$0xff]  ;;  %v732_v46 = vld [vmem:[%s1588_s3 + $0x18] sm:$0xff]  ;;  %v734_v49 = vld [vmem:[%s1588_s3 + $0x28] sm:$0xff] }
  0x19   : > { %358 = vmatpush1.bf16.msra.mxu0 %v254_v28  ;;  %471 = vmatpush1.bf16.msra.mxu1 %v256_v30  ;;  %v1171_v47 = vld [vmem:[%s1586_s1 + $0x18] sm:$0xff]   ;;  %v731_v48 = vld [vmem:[%s1588_s3 + $0x10] sm:$0xff]  ;;  %v733_v50 = vld [vmem:[%s1588_s3 + $0x20] sm:$0xff] }
  0x1a   : > { %v736_v51 = vld [vmem:[%s1588_s3 + $0x38] sm:$0xff]  ;;  %v1172_v52 = vld [vmem:[%s1586_s1 + $0x20] sm:$0xff]   ;;  %v735_v53 = vld [vmem:[%s1588_s3 + $0x30] sm:$0xff] }
  0x1b   : > { %622 = vperm.xlu1 %1167, %v576_v31   ;;  %617 = vperm.xlu0 %1166, %v575_v33   ;;  %v738_v54 = vld [vmem:[%s1588_s3 + $0x48] sm:$0xff]  ;;  %v737_v55 = vld [vmem:[%s1588_s3 + $0x40] sm:$0xff]  ;;  %v740_v56 = vld [vmem:[%s1588_s3 + $0x58] sm:$0xff] }
  0x1c   : > { %1121 = vmatmul.mubr.msk.bf16.vlgmr.msra.gmra.mxu0 %vm318_vm0, %v1168_v32  ;;  %1129 = vmatmul.mubr.msk.bf16.vlgmr.msra.gmra.mxu1 %vm318_vm0, %v1168_v32  ;;  %v1173_v57 = vld [vmem:[%s1586_s1 + $0x28] sm:$0xff]   ;;  %v739_v58 = vld [vmem:[%s1588_s3 + $0x50] sm:$0xff]  ;;  %v741_v60 = vld [vmem:[%s1588_s3 + $0x60] sm:$0xff] }
  0x1d   : > { %385 = vmatprep.mubr.bf16.mxu0 %v1200_v0  ;;  %498 = vmatprep.mubr.bf16.mxu1 %v1200_v0  ;;  %v742_v59 = vld [vmem:[%s1588_s3 + $0x68] sm:$0xff]  ;;  %v744_v61 = vld [vmem:[%s1588_s3 + $0x78] sm:$0xff]  ;;  %v1174_v62 = vld [vmem:[%s1586_s1 + $0x30] sm:$0xff]  }
  0x1e   : > { %v743_v63 = vld [vmem:[%s1588_s3 + $0x70] sm:$0xff]  ;;  %v1175_v1 = vld [vmem:[%s1586_s1 + $0x38] sm:$0xff]  }
  0x1f   : > { %632 = vperm.xlu1 %1167, %v578_v34   ;;  %627 = vperm.xlu0 %1166, %v577_v35  }
  0x23   : > { %642 = vperm.xlu1 %1167, %v580_v36   ;;  %637 = vperm.xlu0 %1166, %v579_v38  }
  0x24   : > { %1122 = vmatmul.mubr.msk.bf16.gmra.mxu0 %vm318_vm0, %v1169_v37  ;;  %1130 = vmatmul.mubr.msk.bf16.gmra.mxu1 %vm318_vm0, %v1169_v37 }
  0x25   : > { %395 = vmatprep.mubr.bf16.mxu0 %v1200_v0  ;;  %508 = vmatprep.mubr.bf16.mxu1 %v1200_v0 }
  0x27   : > { %652 = vperm.xlu1 %1167, %v582_v39   ;;  %647 = vperm.xlu0 %1166, %v581_v40  }
  0x2b   : > { %662 = vperm.xlu1 %1167, %v584_v41   ;;  %657 = vperm.xlu0 %1166, %v583_v43  }
  0x2c   : > { %1123 = vmatmul.mubr.msk.bf16.gmra.mxu0 %vm318_vm0, %v1170_v42  ;;  %1131 = vmatmul.mubr.msk.bf16.gmra.mxu1 %vm318_vm0, %v1170_v42 }
  0x2d   : > { %405 = vmatprep.mubr.bf16.mxu0 %v1200_v0  ;;  %518 = vmatprep.mubr.bf16.mxu1 %v1200_v0 }
  0x2f   : > { %752 = vperm.xlu1 %1167, %v730_v44   ;;  %747 = vperm.xlu0 %1166, %v729_v45  }
  0x33   : > { %762 = vperm.xlu1 %1167, %v732_v46   ;;  %757 = vperm.xlu0 %1166, %v731_v48  }
  0x34   : > { %1124 = vmatmul.mubr.msk.bf16.gmra.mxu0 %vm318_vm0, %v1171_v47  ;;  %1132 = vmatmul.mubr.msk.bf16.gmra.mxu1 %vm318_vm0, %v1171_v47 }
  0x35   : > { %415 = vmatprep.mubr.bf16.mxu0 %v1200_v0  ;;  %528 = vmatprep.mubr.bf16.mxu1 %v1200_v0 }
  0x37   : > { %772 = vperm.xlu1 %1167, %v734_v49   ;;  %767 = vperm.xlu0 %1166, %v733_v50  }
  0x3b   : > { %782 = vperm.xlu1 %1167, %v736_v51   ;;  %777 = vperm.xlu0 %1166, %v735_v53  }
  0x3c   : > { %1125 = vmatmul.mubr.msk.bf16.gmra.mxu0 %vm318_vm0, %v1172_v52  ;;  %1133 = vmatmul.mubr.msk.bf16.gmra.mxu1 %vm318_vm0, %v1172_v52 }
  0x3d   : > { %425 = vmatprep.mubr.bf16.mxu0 %v1200_v0  ;;  %538 = vmatprep.mubr.bf16.mxu1 %v1200_v0 }
  0x3f   : > { %792 = vperm.xlu1 %1167, %v738_v54   ;;  %787 = vperm.xlu0 %1166, %v737_v55  }
  0x43   : > { %802 = vperm.xlu1 %1167, %v740_v56   ;;  %797 = vperm.xlu0 %1166, %v739_v58  }
  0x44   : > { %1126 = vmatmul.mubr.msk.bf16.gmra.mxu0 %vm318_vm0, %v1173_v57  ;;  %1134 = vmatmul.mubr.msk.bf16.gmra.mxu1 %vm318_vm0, %v1173_v57 }
  0x45   : > { %435 = vmatprep.mubr.bf16.mxu0 %v1200_v0  ;;  %548 = vmatprep.mubr.bf16.mxu1 %v1200_v0 }
  0x47   : > { %812 = vperm.xlu1 %1167, %v742_v59   ;;  %807 = vperm.xlu0 %1166, %v741_v60  }
  0x4b   : > { %822 = vperm.xlu1 %1167, %v744_v61   ;;  %817 = vperm.xlu0 %1166, %v743_v63  }
  0x4c   : > { %1127 = vmatmul.mubr.msk.bf16.gmra.mxu0 %vm318_vm0, %v1174_v62  ;;  %1135 = vmatmul.mubr.msk.bf16.gmra.mxu1 %vm318_vm0, %v1174_v62 }
  0x4d   : > { %445 = vmatprep.mubr.bf16.mxu0 %v1200_v0  ;;  %558 = vmatprep.mubr.bf16.mxu1 %v1200_v0 }
  0x54   : > { %1128 = vmatmul.mubr.msk.bf16.gmra.mxu0 %vm318_vm0, %v1175_v1  ;;  %1136 = vmatmul.mubr.msk.bf16.gmra.mxu1 %vm318_vm0, %v1175_v1 }
  0x8a   : > { %v588_v2 = vpop.permute.xlu0 %587  ;;  %v1422_v3 = vpop.permute.xlu1 %597 }
  0x8e   : > { %v593_v4 = vpop.permute.xlu0 %592  ;;  %v1424_v5 = vpop.permute.xlu1 %602 }
  0x92   : > { %v1426_v6 = vpop.permute.xlu0 %607  ;;  %v1428_v7 = vpop.permute.xlu1 %612 }
  0x96   : > { %v1430_v0 = vpop.permute.xlu0 %617  ;;  %v1432_v8 = vpop.permute.xlu1 %622 }
  0x9a   : > { %v1434_v9 = vpop.permute.xlu0 %627  ;;  %v1436_v10 = vpop.permute.xlu1 %632 }
  0x9e   : > { %v1438_v11 = vpop.permute.xlu0 %637  ;;  %v1440_v12 = vpop.permute.xlu1 %642 }
  0xa2   : > { %v1442_v13 = vpop.permute.xlu0 %647  ;;  %v1444_v14 = vpop.permute.xlu1 %652 }
  0xa6   : > { %v1446_v15 = vpop.permute.xlu0 %657  ;;  %v1448_v16 = vpop.permute.xlu1 %662 }
  0xaa   : > { %v748_v20 = vpop.permute.xlu0 %747  ;;  %v753_v33 = vpop.permute.xlu1 %752 }
  0xae   : > { %v758_v50 = vpop.permute.xlu0 %757 }
  0xdc   : > { %v377_v17 = vpop.f32.mrf.mxu0  ;;  %v490_v19 = vpop.f32.mrf.mxu1 }
  0xdd   : > { %v665_v18 = vmul.f32 %v588_v2, %v377_v17  ;;  %v667_v21 = vmul.f32 %v588_v2, %v490_v19  ;;  %v763_v17 = vpop.permute.xlu1 %762 }
  0xde   : > { %v379_v22 = vpop.f32.mrf.mxu0  ;;  %v492_v25 = vpop.f32.mrf.mxu1 }
  0xdf   : > { %v825_v23 = vadd.f32 %v748_v20, %v665_v18  ;;  %v666_v24 = vmul.f32 %v588_v2, %v379_v22  ;;  %v827_v26 = vadd.f32 %v748_v20, %v667_v21  ;;  %v668_v27 = vmul.f32 %v588_v2, %v492_v25 }
  0xe0   : > { %v381_v28 = vpop.f32.mrf.mxu0  ;;  %v494_v32 = vpop.f32.mrf.mxu1 }
  0xe1   : > { %v889_v29 = vmax.f32 %v825_v23, 0.0  ;;  %v826_v30 = vadd.f32 %v748_v20, %v666_v24  ;;  %v669_v31 = vmul.f32 %v593_v4, %v381_v28  ;;  %v891_v34 = vmax.f32 %v827_v26, 0.0 }
  0xe2   : > { %v828_v35 = vadd.f32 %v748_v20, %v668_v27  ;;  %v671_v36 = vmul.f32 %v593_v4, %v494_v32  ;;  %v383_v37 = vpop.f32.mrf.mxu0  ;;  %v496_v41 = vpop.f32.mrf.mxu1 }
  0xe3   : > { %953 = vst [vmem:[%s1454_s14] sm:$0xff] %v889_v29  ;;  %v890_v38 = vmax.f32 %v826_v30, 0.0  ;;  %v829_v39 = vadd.f32 %v753_v33, %v669_v31  ;;  %v670_v40 = vmul.f32 %v593_v4, %v383_v37  ;;  %955 = vst [vmem:[%s1454_s14 + $0x10] sm:$0xff] %v891_v34  ;;  %v672_v44 = vmul.f32 %v593_v4, %v496_v41 }
  0xe4   : > { %v892_v42 = vmax.f32 %v828_v35, 0.0  ;;  %v831_v43 = vadd.f32 %v753_v33, %v671_v36  ;;  %v387_v45 = vpop.f32.mrf.mxu0  ;;  %v500_v49 = vpop.f32.mrf.mxu1 }
  0xe5   : > { %954 = vst [vmem:[%s1454_s14 + $0x8] sm:$0xff] %v890_v38  ;;  %v893_v46 = vmax.f32 %v829_v39, 0.0  ;;  %v830_v47 = vadd.f32 %v753_v33, %v670_v40  ;;  %v673_v48 = vmul.f32 %v1422_v3, %v387_v45  ;;  %v832_v52 = vadd.f32 %v753_v33, %v672_v44  ;;  %v768_v33 = vpop.permute.xlu0 %767 }
  0xe6   : > { %956 = vst [vmem:[%s1454_s14 + $0x18] sm:$0xff] %v892_v42  ;;  %v895_v51 = vmax.f32 %v831_v43, 0.0  ;;  %v675_v53 = vmul.f32 %v1422_v3, %v500_v49  ;;  %v389_v54 = vpop.f32.mrf.mxu0  ;;  %v502_v58 = vpop.f32.mrf.mxu1 }
  0xe7   : > { %957 = vst [vmem:[%s1454_s14 + $0x20] sm:$0xff] %v893_v46  ;;  %v894_v55 = vmax.f32 %v830_v47, 0.0  ;;  %v833_v56 = vadd.f32 %v758_v50, %v673_v48  ;;  %v674_v57 = vmul.f32 %v1422_v3, %v389_v54  ;;  %v896_v59 = vmax.f32 %v832_v52, 0.0  ;;  %v773_v49 = vpop.permute.xlu1 %772 }
  0xe8   : > { %959 = vst [vmem:[%s1454_s14 + $0x30] sm:$0xff] %v895_v51  ;;  %v835_v60 = vadd.f32 %v758_v50, %v675_v53  ;;  %v676_v61 = vmul.f32 %v1422_v3, %v502_v58  ;;  %v391_v62 = vpop.f32.mrf.mxu0  ;;  %v504_v4 = vpop.f32.mrf.mxu1 }
  0xe9   : > { %958 = vst [vmem:[%s1454_s14 + $0x28] sm:$0xff] %v894_v55  ;;  %v897_v63 = vmax.f32 %v833_v56, 0.0  ;;  %v834_v1 = vadd.f32 %v758_v50, %v674_v57  ;;  %v677_v2 = vmul.f32 %v1424_v5, %v391_v62  ;;  %960 = vst [vmem:[%s1454_s14 + $0x38] sm:$0xff] %v896_v59  ;;  %v679_v20 = vmul.f32 %v1424_v5, %v504_v4 }
  0xea   : > { %v899_v18 = vmax.f32 %v835_v60, 0.0  ;;  %v836_v19 = vadd.f32 %v758_v50, %v676_v61  ;;  %v393_v21 = vpop.f32.mrf.mxu0  ;;  %v506_v24 = vpop.f32.mrf.mxu1 }
  0xeb   : > { %961 = vst [vmem:[%s1454_s14 + $0x40] sm:$0xff] %v897_v63  ;;  %v898_v22 = vmax.f32 %v834_v1, 0.0  ;;  %v837_v3 = vadd.f32 %v763_v17, %v677_v2  ;;  %v678_v23 = vmul.f32 %v1424_v5, %v393_v21  ;;  %v839_v26 = vadd.f32 %v763_v17, %v679_v20  ;;  %v778_v2 = vpop.permute.xlu0 %777 }
  0xec   : > { %963 = vst [vmem:[%s1454_s14 + $0x50] sm:$0xff] %v899_v18  ;;  %v900_v25 = vmax.f32 %v836_v19, 0.0  ;;  %v680_v27 = vmul.f32 %v1424_v5, %v506_v24  ;;  %v397_v28 = vpop.f32.mrf.mxu0  ;;  %v510_v32 = vpop.f32.mrf.mxu1 }
  0xed   : > { %962 = vst [vmem:[%s1454_s14 + $0x48] sm:$0xff] %v898_v22  ;;  %v901_v29 = vmax.f32 %v837_v3, 0.0  ;;  %v838_v30 = vadd.f32 %v763_v17, %v678_v23  ;;  %v681_v31 = vmul.f32 %v1426_v6, %v397_v28  ;;  %v903_v34 = vmax.f32 %v839_v26, 0.0 }
  0xee   : > { %964 = vst [vmem:[%s1454_s14 + $0x58] sm:$0xff] %v900_v25  ;;  %v840_v35 = vadd.f32 %v763_v17, %v680_v27  ;;  %v683_v36 = vmul.f32 %v1426_v6, %v510_v32  ;;  %v399_v37 = vpop.f32.mrf.mxu0  ;;  %v512_v40 = vpop.f32.mrf.mxu1 }
  0xef   : > { %965 = vst [vmem:[%s1454_s14 + $0x60] sm:$0xff] %v901_v29  ;;  %v902_v38 = vmax.f32 %v838_v30, 0.0  ;;  %v841_v5 = vadd.f32 %v768_v33, %v681_v31  ;;  %v682_v39 = vmul.f32 %v1426_v6, %v399_v37  ;;  %967 = vst [vmem:[%s1454_s14 + $0x70] sm:$0xff] %v903_v34  ;;  %v684_v43 = vmul.f32 %v1426_v6, %v512_v40  ;;  %v783_v30 = vpop.permute.xlu1 %782 }
  0xf0   : > { %v904_v41 = vmax.f32 %v840_v35, 0.0  ;;  %v843_v42 = vadd.f32 %v768_v33, %v683_v36  ;;  %v401_v44 = vpop.f32.mrf.mxu0  ;;  %v514_v48 = vpop.f32.mrf.mxu1 }
  0xf1   : > { %966 = vst [vmem:[%s1454_s14 + $0x68] sm:$0xff] %v902_v38  ;;  %v905_v45 = vmax.f32 %v841_v5, 0.0  ;;  %v842_v46 = vadd.f32 %v768_v33, %v682_v39  ;;  %v685_v47 = vmul.f32 %v1428_v7, %v401_v44  ;;  %v844_v51 = vadd.f32 %v768_v33, %v684_v43 }
  0xf2   : > { %968 = vst [vmem:[%s1454_s14 + $0x78] sm:$0xff] %v904_v41  ;;  %v907_v50 = vmax.f32 %v843_v42, 0.0  ;;  %v687_v52 = vmul.f32 %v1428_v7, %v514_v48  ;;  %v403_v53 = vpop.f32.mrf.mxu0  ;;  %v516_v56 = vpop.f32.mrf.mxu1 }
  0xf3   : > { %969 = vst [vmem:[%s1454_s14 + $0x80] sm:$0xff] %v905_v45  ;;  %v906_v54 = vmax.f32 %v842_v46, 0.0  ;;  %v845_v6 = vadd.f32 %v773_v49, %v685_v47  ;;  %v686_v55 = vmul.f32 %v1428_v7, %v403_v53  ;;  %v908_v57 = vmax.f32 %v844_v51, 0.0  ;;  %v788_v45 = vpop.permute.xlu0 %787 }
  0xf4   : > { %971 = vst [vmem:[%s1454_s14 + $0x90] sm:$0xff] %v907_v50  ;;  %v847_v58 = vadd.f32 %v773_v49, %v687_v52  ;;  %v688_v59 = vmul.f32 %v1428_v7, %v516_v56  ;;  %v407_v60 = vpop.f32.mrf.mxu0  ;;  %v520_v1 = vpop.f32.mrf.mxu1 }
  0xf5   : > { %970 = vst [vmem:[%s1454_s14 + $0x88] sm:$0xff] %v906_v54  ;;  %v909_v61 = vmax.f32 %v845_v6, 0.0  ;;  %v846_v62 = vadd.f32 %v773_v49, %v686_v55  ;;  %v689_v63 = vmul.f32 %v1430_v0, %v407_v60  ;;  %972 = vst [vmem:[%s1454_s14 + $0x98] sm:$0xff] %v908_v57  ;;  %v691_v18 = vmul.f32 %v1430_v0, %v520_v1  ;;  %v793_v60 = vpop.permute.xlu1 %792 }
  0xf6   : > { %v911_v4 = vmax.f32 %v847_v58, 0.0  ;;  %v848_v17 = vadd.f32 %v773_v49, %v688_v59  ;;  %v409_v19 = vpop.f32.mrf.mxu0  ;;  %v522_v22 = vpop.f32.mrf.mxu1 }
  0xf7   : > { %973 = vst [vmem:[%s1454_s14 + $0xa0] sm:$0xff] %v909_v61  ;;  %v910_v20 = vmax.f32 %v846_v62, 0.0  ;;  %v849_v7 = vadd.f32 %v778_v2, %v689_v63  ;;  %v690_v21 = vmul.f32 %v1430_v0, %v409_v19  ;;  %v851_v23 = vadd.f32 %v778_v2, %v691_v18 }
  0xf8   : > { %975 = vst [vmem:[%s1454_s14 + $0xb0] sm:$0xff] %v911_v4  ;;  %v912_v3 = vmax.f32 %v848_v17, 0.0  ;;  %v692_v24 = vmul.f32 %v1430_v0, %v522_v22  ;;  %v411_v25 = vpop.f32.mrf.mxu0  ;;  %v524_v29 = vpop.f32.mrf.mxu1 }
  0xf9   : > { %974 = vst [vmem:[%s1454_s14 + $0xa8] sm:$0xff] %v910_v20  ;;  %v913_v26 = vmax.f32 %v849_v7, 0.0  ;;  %v850_v27 = vadd.f32 %v778_v2, %v690_v21  ;;  %v693_v28 = vmul.f32 %v1432_v8, %v411_v25  ;;  %v915_v31 = vmax.f32 %v851_v23, 0.0 }
  0xfa   : > { %976 = vst [vmem:[%s1454_s14 + $0xb8] sm:$0xff] %v912_v3  ;;  %v852_v32 = vadd.f32 %v778_v2, %v692_v24  ;;  %v695_v33 = vmul.f32 %v1432_v8, %v524_v29  ;;  %v413_v34 = vpop.f32.mrf.mxu0  ;;  %v526_v37 = vpop.f32.mrf.mxu1 }
  0xfb   : > { %977 = vst [vmem:[%s1454_s14 + $0xc0] sm:$0xff] %v913_v26  ;;  %v914_v35 = vmax.f32 %v850_v27, 0.0  ;;  %v853_v0 = vadd.f32 %v783_v30, %v693_v28  ;;  %v694_v36 = vmul.f32 %v1432_v8, %v413_v34  ;;  %979 = vst [vmem:[%s1454_s14 + $0xd0] sm:$0xff] %v915_v31  ;;  %v696_v39 = vmul.f32 %v1432_v8, %v526_v37  ;;  %v798_v24 = vpop.permute.xlu0 %797 }
  0xfc   : > { %v916_v38 = vmax.f32 %v852_v32, 0.0  ;;  %v855_v5 = vadd.f32 %v783_v30, %v695_v33  ;;  %v417_v40 = vpop.f32.mrf.mxu0  ;;  %v530_v44 = vpop.f32.mrf.mxu1 }
  0xfd   : > { %978 = vst [vmem:[%s1454_s14 + $0xc8] sm:$0xff] %v914_v35  ;;  %v917_v41 = vmax.f32 %v853_v0, 0.0  ;;  %v854_v42 = vadd.f32 %v783_v30, %v694_v36  ;;  %v697_v43 = vmul.f32 %v1434_v9, %v417_v40  ;;  %v856_v47 = vadd.f32 %v783_v30, %v696_v39 }
  0xfe   : > { %980 = vst [vmem:[%s1454_s14 + $0xd8] sm:$0xff] %v916_v38  ;;  %v919_v46 = vmax.f32 %v855_v5, 0.0  ;;  %v699_v48 = vmul.f32 %v1434_v9, %v530_v44  ;;  %v419_v49 = vpop.f32.mrf.mxu0  ;;  %v532_v52 = vpop.f32.mrf.mxu1 }
  0xff   : > { %981 = vst [vmem:[%s1454_s14 + $0xe0] sm:$0xff] %v917_v41  ;;  %v918_v50 = vmax.f32 %v854_v42, 0.0  ;;  %v857_v8 = vadd.f32 %v788_v45, %v697_v43  ;;  %v698_v51 = vmul.f32 %v1434_v9, %v419_v49  ;;  %v920_v53 = vmax.f32 %v856_v47, 0.0  ;;  %v803_v5 = vpop.permute.xlu1 %802 }
 0x100   : > { %983 = vst [vmem:[%s1454_s14 + $0xf0] sm:$0xff] %v919_v46  ;;  %v859_v54 = vadd.f32 %v788_v45, %v699_v48  ;;  %v700_v6 = vmul.f32 %v1434_v9, %v532_v52  ;;  %v421_v55 = vpop.f32.mrf.mxu0  ;;  %v534_v59 = vpop.f32.mrf.mxu1 }
 0x101   : > { %982 = vst [vmem:[%s1454_s14 + $0xe8] sm:$0xff] %v918_v50  ;;  %v921_v56 = vmax.f32 %v857_v8, 0.0  ;;  %v858_v57 = vadd.f32 %v788_v45, %v698_v51  ;;  %v701_v58 = vmul.f32 %v1436_v10, %v421_v55  ;;  %984 = vst [vmem:[%s1454_s14 + $0xf8] sm:$0xff] %v920_v53  ;;  %v703_v63 = vmul.f32 %v1436_v10, %v534_v59  ;;  %v808_v53 = vpop.permute.xlu0 %807 }
 0x102   : > { %v923_v61 = vmax.f32 %v859_v54, 0.0  ;;  %v860_v62 = vadd.f32 %v788_v45, %v700_v6  ;;  %v423_v1 = vpop.f32.mrf.mxu0  ;;  %v536_v17 = vpop.f32.mrf.mxu1 }
 0x103   : > { %985 = vst [vmem:[%s1454_s14 + $0x100] sm:$0xff] %v921_v56  ;;  %v922_v2 = vmax.f32 %v858_v57, 0.0  ;;  %v861_v9 = vadd.f32 %v793_v60, %v701_v58  ;;  %v702_v4 = vmul.f32 %v1436_v10, %v423_v1  ;;  %v863_v19 = vadd.f32 %v793_v60, %v703_v63 }
 0x104   : > { %987 = vst [vmem:[%s1454_s14 + $0x110] sm:$0xff] %v923_v61  ;;  %v924_v18 = vmax.f32 %v860_v62, 0.0  ;;  %v704_v20 = vmul.f32 %v1436_v10, %v536_v17  ;;  %v427_v7 = vpop.f32.mrf.mxu0  ;;  %v540_v23 = vpop.f32.mrf.mxu1 }
 0x105   : > { %986 = vst [vmem:[%s1454_s14 + $0x108] sm:$0xff] %v922_v2  ;;  %v925_v21 = vmax.f32 %v861_v9, 0.0  ;;  %v862_v22 = vadd.f32 %v793_v60, %v702_v4  ;;  %v705_v3 = vmul.f32 %v1438_v11, %v427_v7  ;;  %v927_v25 = vmax.f32 %v863_v19, 0.0  ;;  %v813_v17 = vpop.permute.xlu1 %812 }
 0x106   : > { %988 = vst [vmem:[%s1454_s14 + $0x118] sm:$0xff] %v924_v18  ;;  %v864_v26 = vadd.f32 %v793_v60, %v704_v20  ;;  %v707_v27 = vmul.f32 %v1438_v11, %v540_v23  ;;  %v429_v28 = vpop.f32.mrf.mxu0  ;;  %v542_v31 = vpop.f32.mrf.mxu1 }
 0x107   : > { %989 = vst [vmem:[%s1454_s14 + $0x120] sm:$0xff] %v925_v21  ;;  %v926_v29 = vmax.f32 %v862_v22, 0.0  ;;  %v865_v10 = vadd.f32 %v798_v24, %v705_v3  ;;  %v706_v30 = vmul.f32 %v1438_v11, %v429_v28  ;;  %991 = vst [vmem:[%s1454_s14 + $0x130] sm:$0xff] %v927_v25  ;;  %v708_v34 = vmul.f32 %v1438_v11, %v542_v31 }
 0x108   : > { %v928_v32 = vmax.f32 %v864_v26, 0.0  ;;  %v867_v33 = vadd.f32 %v798_v24, %v707_v27  ;;  %v431_v35 = vpop.f32.mrf.mxu0  ;;  %v544_v38 = vpop.f32.mrf.mxu1 }
 0x109   : > { %990 = vst [vmem:[%s1454_s14 + $0x128] sm:$0xff] %v926_v29  ;;  %v929_v0 = vmax.f32 %v865_v10, 0.0  ;;  %v866_v36 = vadd.f32 %v798_v24, %v706_v30  ;;  %v709_v37 = vmul.f32 %v1440_v12, %v431_v35  ;;  %v868_v40 = vadd.f32 %v798_v24, %v708_v34  ;;  %v818_v30 = vpop.permute.xlu0 %817 }
 0x10a   : > { %992 = vst [vmem:[%s1454_s14 + $0x138] sm:$0xff] %v928_v32  ;;  %v931_v39 = vmax.f32 %v867_v33, 0.0  ;;  %v711_v41 = vmul.f32 %v1440_v12, %v544_v38  ;;  %v433_v42 = vpop.f32.mrf.mxu0  ;;  %v546_v45 = vpop.f32.mrf.mxu1 }
 0x10b   : > { %993 = vst [vmem:[%s1454_s14 + $0x140] sm:$0xff] %v929_v0  ;;  %v930_v43 = vmax.f32 %v866_v36, 0.0  ;;  %v869_v11 = vadd.f32 %v803_v5, %v709_v37  ;;  %v710_v44 = vmul.f32 %v1440_v12, %v433_v42  ;;  %v932_v46 = vmax.f32 %v868_v40, 0.0 }
 0x10c   : > { %995 = vst [vmem:[%s1454_s14 + $0x150] sm:$0xff] %v931_v39  ;;  %v871_v47 = vadd.f32 %v803_v5, %v711_v41  ;;  %v712_v48 = vmul.f32 %v1440_v12, %v546_v45  ;;  %v437_v49 = vpop.f32.mrf.mxu0  ;;  %v550_v52 = vpop.f32.mrf.mxu1 }
 0x10d   : > { %994 = vst [vmem:[%s1454_s14 + $0x148] sm:$0xff] %v930_v43  ;;  %v933_v50 = vmax.f32 %v869_v11, 0.0  ;;  %v870_v8 = vadd.f32 %v803_v5, %v710_v44  ;;  %v713_v51 = vmul.f32 %v1442_v13, %v437_v49  ;;  %996 = vst [vmem:[%s1454_s14 + $0x158] sm:$0xff] %v932_v46  ;;  %v715_v55 = vmul.f32 %v1442_v13, %v550_v52  ;;  %v823_v11 = vpop.permute.xlu1 %822 }
 0x10e   : > { %v935_v54 = vmax.f32 %v871_v47, 0.0  ;;  %v872_v6 = vadd.f32 %v803_v5, %v712_v48  ;;  %v439_v56 = vpop.f32.mrf.mxu0  ;;  %v552_v59 = vpop.f32.mrf.mxu1 }
 0x10f   : > { %997 = vst [vmem:[%s1454_s14 + $0x160] sm:$0xff] %v933_v50  ;;  %v934_v57 = vmax.f32 %v870_v8, 0.0  ;;  %v873_v12 = vadd.f32 %v808_v53, %v713_v51  ;;  %v714_v58 = vmul.f32 %v1442_v13, %v439_v56  ;;  %v875_v61 = vadd.f32 %v808_v53, %v715_v55 }
 0x110   : > { %999 = vst [vmem:[%s1454_s14 + $0x170] sm:$0xff] %v935_v54  ;;  %v936_v60 = vmax.f32 %v872_v6, 0.0  ;;  %v716_v62 = vmul.f32 %v1442_v13, %v552_v59  ;;  %v441_v63 = vpop.f32.mrf.mxu0  ;;  %v554_v4 = vpop.f32.mrf.mxu1 }
 0x111   : > { %998 = vst [vmem:[%s1454_s14 + $0x168] sm:$0xff] %v934_v57  ;;  %v937_v1 = vmax.f32 %v873_v12, 0.0  ;;  %v874_v2 = vadd.f32 %v808_v53, %v714_v58  ;;  %v717_v9 = vmul.f32 %v1444_v14, %v441_v63  ;;  %v939_v18 = vmax.f32 %v875_v61, 0.0 }
 0x112   : > { %1000 = vst [vmem:[%s1454_s14 + $0x178] sm:$0xff] %v936_v60  ;;  %v876_v19 = vadd.f32 %v808_v53, %v716_v62  ;;  %v719_v20 = vmul.f32 %v1444_v14, %v554_v4  ;;  %v443_v7 = vpop.f32.mrf.mxu0  ;;  %v556_v3 = vpop.f32.mrf.mxu1 }
 0x113   : > { %1001 = vst [vmem:[%s1454_s14 + $0x180] sm:$0xff] %v937_v1  ;;  %v938_v21 = vmax.f32 %v874_v2, 0.0  ;;  %v877_v13 = vadd.f32 %v813_v17, %v717_v9  ;;  %v718_v22 = vmul.f32 %v1444_v14, %v443_v7  ;;  %1003 = vst [vmem:[%s1454_s14 + $0x190] sm:$0xff] %v939_v18  ;;  %v720_v25 = vmul.f32 %v1444_v14, %v556_v3 }
 0x114   : > { %v940_v23 = vmax.f32 %v876_v19, 0.0  ;;  %v879_v24 = vadd.f32 %v813_v17, %v719_v20  ;;  %v447_v26 = vpop.f32.mrf.mxu0  ;;  %v560_v10 = vpop.f32.mrf.mxu1 }
 0x115   : > { %1002 = vst [vmem:[%s1454_s14 + $0x188] sm:$0xff] %v938_v21  ;;  %v941_v27 = vmax.f32 %v877_v13, 0.0  ;;  %v878_v28 = vadd.f32 %v813_v17, %v718_v22  ;;  %v721_v29 = vmul.f32 %v1446_v15, %v447_v26  ;;  %v880_v32 = vadd.f32 %v813_v17, %v720_v25 }
 0x116   : > { %1004 = vst [vmem:[%s1454_s14 + $0x198] sm:$0xff] %v940_v23  ;;  %v943_v31 = vmax.f32 %v879_v24, 0.0  ;;  %v723_v33 = vmul.f32 %v1446_v15, %v560_v10  ;;  %v449_v34 = vpop.f32.mrf.mxu0  ;;  %v562_v36 = vpop.f32.mrf.mxu1 }
 0x117   : > { %1005 = vst [vmem:[%s1454_s14 + $0x1a0] sm:$0xff] %v941_v27  ;;  %v942_v35 = vmax.f32 %v878_v28, 0.0  ;;  %v881_v14 = vadd.f32 %v818_v30, %v721_v29  ;;  %v722_v0 = vmul.f32 %v1446_v15, %v449_v34  ;;  %v944_v37 = vmax.f32 %v880_v32, 0.0 }
 0x118   : > { %1007 = vst [vmem:[%s1454_s14 + $0x1b0] sm:$0xff] %v943_v31  ;;  %v883_v38 = vadd.f32 %v818_v30, %v723_v33  ;;  %v724_v5 = vmul.f32 %v1446_v15, %v562_v36  ;;  %v451_v39 = vpop.f32.mrf.mxu0  ;;  %v564_v43 = vpop.f32.mrf.mxu1 }
 0x119   : > { %1006 = vst [vmem:[%s1454_s14 + $0x1a8] sm:$0xff] %v942_v35  ;;  %v945_v40 = vmax.f32 %v881_v14, 0.0  ;;  %v882_v41 = vadd.f32 %v818_v30, %v722_v0  ;;  %v725_v42 = vmul.f32 %v1448_v16, %v451_v39  ;;  %1008 = vst [vmem:[%s1454_s14 + $0x1b8] sm:$0xff] %v944_v37  ;;  %v727_v46 = vmul.f32 %v1448_v16, %v564_v43 }
 0x11a   : > { %v947_v44 = vmax.f32 %v883_v38, 0.0  ;;  %v884_v45 = vadd.f32 %v818_v30, %v724_v5  ;;  %v453_v47 = vpop.f32.mrf.mxu0  ;;  %v566_v50 = vpop.f32.mrf.mxu1 }
 0x11b   : > { %1009 = vst [vmem:[%s1454_s14 + $0x1c0] sm:$0xff] %v945_v40  ;;  %v946_v15 = vmax.f32 %v882_v41, 0.0  ;;  %v885_v48 = vadd.f32 %v823_v11, %v725_v42  ;;  %v726_v49 = vmul.f32 %v1448_v16, %v453_v47  ;;  %v887_v51 = vadd.f32 %v823_v11, %v727_v46 }
 0x11c   : > { %1011 = vst [vmem:[%s1454_s14 + $0x1d0] sm:$0xff] %v947_v44  ;;  %v948_v8 = vmax.f32 %v884_v45, 0.0  ;;  %v728_v52 = vmul.f32 %v1448_v16, %v566_v50 }
 0x11d   : > { %1010 = vst [vmem:[%s1454_s14 + $0x1c8] sm:$0xff] %v946_v15  ;;  %v949_v53 = vmax.f32 %v885_v48, 0.0  ;;  %v886_v54 = vadd.f32 %v823_v11, %v726_v49  ;;  %v951_v6 = vmax.f32 %v887_v51, 0.0 }
 0x11e   : > { %1012 = vst [vmem:[%s1454_s14 + $0x1d8] sm:$0xff] %v948_v8  ;;  %v888_v55 = vadd.f32 %v823_v11, %v728_v52 }
 0x11f   : > { %1013 = vst [vmem:[%s1454_s14 + $0x1e0] sm:$0xff] %v949_v53  ;;  %v950_v56 = vmax.f32 %v886_v54, 0.0  ;;  %1015 = vst [vmem:[%s1454_s14 + $0x1f0] sm:$0xff] %v951_v6 }
 0x120   : > { %v952_v57 = vmax.f32 %v888_v55, 0.0 }
 0x121   : > { %1014 = vst [vmem:[%s1454_s14 + $0x1e8] sm:$0xff] %v950_v56 }
 0x122   : > { %1016 = vst [vmem:[%s1454_s14 + $0x1f8] sm:$0xff] %v952_v57 }
 0x123 PF: > { %s14_s17 = sadd.s32 1, %s1198_s17   ;;  %s1590_s15 = smov %s1194_s16 }
 0x124   : > { %p11_p5 = scmp.ge.s32.totalorder %s14_s17, 4   ;;  %s1591_s16 = smov %s1593_s18 }
 0x126   :  { %13 = sbr.rel (!%p11_p5) target bundleno = 2 (0x2), region = 66 }

</bundles_post_ra>
